<compile_context>
chip_gen: v6e
topology: v6e:2x2x1
jax: 0.10.0
libtpu: 0.0.40
codegen_flags: <defaults>
</compile_context>

<pallas_src>
import math

import jax
import jax.numpy as jnp
from jax import lax
from jax.experimental import pallas as pl
from jax.experimental.pallas import tpu as pltpu


_INV_SQRT2 = 1.0 / math.sqrt(2.0)


def _gelu_exact(x):
    # PyTorch nn.GELU() default: exact erf-based formulation.
    return 0.5 * x * (1.0 + lax.erf(x * _INV_SQRT2))


def _ffn_kernel(x_ref, w1_ref, w2_ref, o_ref):
    # x_ref:  (1, C, TILE_HW)  pixel tile; channels on sublanes, spatial on lanes
    # w1_ref: (HID, C)         conv1 1x1 weight (out_ch, in_ch), VMEM-resident
    # w2_ref: (C, HID)         conv2 1x1 weight (out_ch, in_ch), VMEM-resident
    # o_ref:  (1, C, TILE_HW)  lane-dense output tile
    x = x_ref[0]                                   # (C, TILE_HW), native dtype
    w1 = w1_ref[...]
    w2 = w2_ref[...]
    # MXU matmuls with f32 accumulation; no explicit operand upcasts.
    h = jnp.dot(w1, x, preferred_element_type=jnp.float32)      # (HID, TILE_HW)
    h = _gelu_exact(h)                                           # GELU in f32
    y = jnp.dot(w2, h.astype(w2.dtype),
                preferred_element_type=jnp.float32)              # (C, TILE_HW)
    o_ref[0] = y.astype(o_ref.dtype)


def _vmem_limit_bytes():
    """Generation-aware VMEM budget: ~80% of physical, capped at 100 MiB.

    v7x (64 MiB physical)  -> ~51 MiB limit (headroom for Mosaic scratch).
    v5e/v6e (128 MiB)      -> 100 MiB limit (don't throttle to a v7x constant).
    """
    try:
        cap = int(pltpu.get_tpu_info().vmem_capacity_bytes)
    except Exception:
        cap = 64 << 20          # conservative (v7x-sized) fallback
    return max(32 << 20, min(int(cap * 0.80), 100 << 20))


def _pick_tile(HW, B, C, HID, isz, vmem_limit, *, min_grid_steps=4):
    """Pick the spatial (lane) tile from a per-lane VMEM byte model."""
    # Resident bytes per lane for one grid step:
    #   x + out blocks, each double-buffered:         4 * C * isz
    #   f32 hidden h (+ cast copy slack) and f32 y:   (2 * HID + C) * 4
    per_lane = 4 * C * isz + (2 * HID + C) * 4
    weights = 2 * 2 * HID * C * isz              # both weights, double-buffered
    budget = vmem_limit - weights - (12 << 20)   # headroom for internal scratch
    budget = max(budget, 4 << 20)
    budget = min(budget, 32 << 20)               # diminishing returns past ~32 MiB
    tile_budget = max(128, (budget // per_lane) // 128 * 128)

    if HW <= tile_budget:
        tile = HW               # full-extent block: always layout-legal
    else:
        tile = tile_budget      # multiple of 128; partial last block is fine
                                # (per-pixel op: padded lanes never contaminate
                                # valid ones and are masked on writeback).

    # Keep a few grid steps alive so v7x's 2 TensorCores both get work.
    # Harmless on single-TC v5e/v6e (blocks remain MB-scale or full-extent).
    steps = B * ((HW + tile - 1) // tile)
    if steps < min_grid_steps and HW > 128:
        want_tiles = -(-min_grid_steps // B)          # ceil
        t = -(-HW // want_tiles)                      # ceil
        t = max(128, (-(-t // 128)) * 128)            # round up to lane multiple
        if t < HW:
            tile = t
    return tile


def base_feed_forward(x_nchw, w1, w2):
    """1x1-conv FFN: Conv2d(C->HID) -> GELU -> Conv2d(HID->C), no bias.

    x_nchw: (B, C, H, W)  NCHW activations (PyTorch layout).
    w1:     (HID, C)      conv1 weight with the trailing 1x1 squeezed out.
    w2:     (C, HID)      conv2 weight with the trailing 1x1 squeezed out.
    """
    B, C, H, W = x_nchw.shape
    HID = w1.shape[0]
    assert w1.shape == (HID, C) and w2.shape == (C, HID)

    HW = H * W
    # Free reshape: NCHW is contiguous, spatial axis becomes the lane axis.
    x = x_nchw.reshape(B, C, HW)
    isz = jnp.dtype(x.dtype).itemsize

    vmem_limit = _vmem_limit_bytes()
    tile = _pick_tile(HW, B, C, HID, isz, vmem_limit)
    grid = (B, (HW + tile - 1) // tile)

    out = pl.pallas_call(
        _ffn_kernel,
        out_shape=jax.ShapeDtypeStruct((B, C, HW), x_nchw.dtype),
        grid_spec=pltpu.PrefetchScalarGridSpec(
            num_scalar_prefetch=0,
            grid=grid,
            in_specs=[
                pl.BlockSpec((1, C, tile), lambda b, j: (b, 0, j)),
                pl.BlockSpec((HID, C), lambda b, j: (0, 0)),   # resident weights
                pl.BlockSpec((C, HID), lambda b, j: (0, 0)),   # resident weights
            ],
            out_specs=pl.BlockSpec((1, C, tile), lambda b, j: (b, 0, j)),
        ),
        compiler_params=pltpu.CompilerParams(
            dimension_semantics=("parallel", "parallel"),
            vmem_limit_bytes=vmem_limit),
    )(x, w1, w2)

    return out.reshape(B, C, H, W)


def _reference(x_nchw, w1, w2):
    # Pure-JAX reference of the two 1x1 convs + exact GELU (f32, high precision).
    B, C, H, W = x_nchw.shape
    xf = x_nchw.reshape(B, C, H * W).astype(jnp.float32)
    h = jnp.einsum('oc,bcp->bop', w1.astype(jnp.float32), xf,
                   precision=lax.Precision.HIGHEST)
    h = _gelu_exact(h)
    y = jnp.einsum('co,bop->bcp', w2.astype(jnp.float32), h,
                   precision=lax.Precision.HIGHEST)
    return y.reshape(B, C, H, W).astype(x_nchw.dtype)


if __name__ == "__main__":
    # Module hyper-params (small, consistent with the forward).
    dim = 4
    ffn_expansion_factor = 2
    hidden = int(dim * ffn_expansion_factor)  # 8
    B, Hs, Ws = 2, 16, 16

    key = jax.random.PRNGKey(0)
    kx, k1, k2 = jax.random.split(key, 3)

    x = jax.random.normal(kx, (B, dim, Hs, Ws), dtype=jnp.float32)

    # Deterministic init matching PyTorch Conv2d default:
    # uniform(-1/sqrt(fan_in), 1/sqrt(fan_in)). 1x1 conv weight (out, in, 1, 1)
    # is stored here with the trailing 1x1 squeezed: (out, in).
    b1 = 1.0 / math.sqrt(dim)
    b2 = 1.0 / math.sqrt(hidden)
    w1 = jax.random.uniform(k1, (hidden, dim), jnp.float32, -b1, b1)
    w2 = jax.random.uniform(k2, (dim, hidden), jnp.float32, -b2, b2)

    out = base_feed_forward(x, w1, w2)
    out = jax.block_until_ready(out)

    ref = _reference(x, w1, w2)
    assert out.shape == x.shape, (out.shape, x.shape)
    assert jnp.allclose(out, ref, atol=1e-4, rtol=1e-4), \
        float(jnp.max(jnp.abs(out - ref)))

    print("KERNEL_OK")
</pallas_src>

<mosaic_0001>
module attributes {stable_mosaic.version = 11 : i64} {
  func.func @_ffn_kernel(%arg0: i32, %arg1: i32, %arg2: memref<1x4x128xf32, #tpu.memory_space<vmem>>, %arg3: memref<8x4xf32, #tpu.memory_space<vmem>>, %arg4: memref<4x8xf32, #tpu.memory_space<vmem>>, %arg5: memref<1x4x128xf32, #tpu.memory_space<vmem>>) attributes {dimension_semantics = [#tpu.dimension_semantics<parallel>, #tpu.dimension_semantics<parallel>], iteration_bounds = array<i64: 2, 2>, scalar_prefetch = 0 : i64, scratch_operands = 0 : i64, tpu.core_type = #tpu.core_type<tc>, window_params = [{transform_indices = @transform_0, window_bounds = array<i64: 1, 4, 128>}, {pipeline_mode = #tpu.pipeline_mode<synchronous>, transform_indices = @transform_1, window_bounds = array<i64: 8, 4>}, {pipeline_mode = #tpu.pipeline_mode<synchronous>, transform_indices = @transform_2, window_bounds = array<i64: 4, 8>}, {transform_indices = @transform_3, window_bounds = array<i64: 1, 4, 128>}]} {
    %c0 = arith.constant 0 : index
    %c0_0 = arith.constant 0 : index
    %c0_1 = arith.constant 0 : index
    %0 = vector.load %arg2[%c0, %c0_0, %c0_1] : memref<1x4x128xf32, #tpu.memory_space<vmem>>, vector<1x4x128xf32>
    %1 = vector.shape_cast %0 : vector<1x4x128xf32> to vector<4x128xf32>
    %c0_2 = arith.constant 0 : index
    %c0_3 = arith.constant 0 : index
    %2 = vector.load %arg3[%c0_2, %c0_3] : memref<8x4xf32, #tpu.memory_space<vmem>>, vector<8x4xf32>
    %c0_4 = arith.constant 0 : index
    %c0_5 = arith.constant 0 : index
    %3 = vector.load %arg4[%c0_4, %c0_5] : memref<4x8xf32, #tpu.memory_space<vmem>>, vector<4x8xf32>
    %cst = arith.constant dense<0.000000e+00> : vector<8x128xf32>
    %4 = tpu.matmul %2, %1, %cst {dimension_numbers = #tpu.dot_dimension_numbers<[1], [0], [0], [1], [0, 0, 1, 1], [], []>} : vector<8x4xf32>, vector<4x128xf32>, vector<8x128xf32> -> vector<8x128xf32>
    %cst_6 = arith.constant 5.000000e-01 : f32
    %5 = vector.broadcast %cst_6 : f32 to vector<8x128xf32>
    %6 = arith.mulf %5, %4 : vector<8x128xf32>
    %cst_7 = arith.constant 0.707106769 : f32
    %7 = vector.broadcast %cst_7 : f32 to vector<8x128xf32>
    %8 = arith.mulf %4, %7 : vector<8x128xf32>
    %9 = math.erf %8 : vector<8x128xf32>
    %cst_8 = arith.constant 1.000000e+00 : f32
    %10 = vector.broadcast %cst_8 : f32 to vector<8x128xf32>
    %11 = arith.addf %10, %9 : vector<8x128xf32>
    %12 = arith.mulf %6, %11 : vector<8x128xf32>
    %cst_9 = arith.constant dense<0.000000e+00> : vector<4x128xf32>
    %13 = tpu.matmul %3, %12, %cst_9 {dimension_numbers = #tpu.dot_dimension_numbers<[1], [0], [0], [1], [0, 0, 1, 1], [], []>} : vector<4x8xf32>, vector<8x128xf32>, vector<4x128xf32> -> vector<4x128xf32>
    %c0_10 = arith.constant 0 : index
    %c0_11 = arith.constant 0 : index
    %c0_12 = arith.constant 0 : index
    %14 = vector.load %arg5[%c0_10, %c0_11, %c0_12] : memref<1x4x128xf32, #tpu.memory_space<vmem>>, vector<1x4x128xf32>
    %15 = vector.shape_cast %14 : vector<1x4x128xf32> to vector<4x128xf32>
    %16 = vector.shape_cast %13 : vector<4x128xf32> to vector<1x4x128xf32>
    tpu.vector_store %arg5[%c0_10, %c0_11, %c0_12], %16 {strides = array<i32>} : memref<1x4x128xf32, #tpu.memory_space<vmem>>, vector<1x4x128xf32>,
    return
  }
  func.func @transform_0(%arg0: i32, %arg1: i32) -> (i32, i32, i32) {
    %c0_i32 = arith.constant 0 : i32
    %c0_i32_0 = arith.constant 0 : i32
    return %arg0, %c0_i32, %arg1 : i32, i32, i32
  }
  func.func @transform_1(%arg0: i32, %arg1: i32) -> (i32, i32) {
    %c0_i32 = arith.constant 0 : i32
    %c0_i32_0 = arith.constant 0 : i32
    %c0_i32_1 = arith.constant 0 : i32
    return %c0_i32, %c0_i32_0 : i32, i32
  }
  func.func @transform_2(%arg0: i32, %arg1: i32) -> (i32, i32) {
    %c0_i32 = arith.constant 0 : i32
    %c0_i32_0 = arith.constant 0 : i32
    %c0_i32_1 = arith.constant 0 : i32
    return %c0_i32, %c0_i32_0 : i32, i32
  }
  func.func @transform_3(%arg0: i32, %arg1: i32) -> (i32, i32, i32) {
    %c0_i32 = arith.constant 0 : i32
    %c0_i32_0 = arith.constant 0 : i32
    return %arg0, %c0_i32, %arg1 : i32, i32, i32
  }
}

</mosaic_0001>

<bundles_post_ra>
// kernel: tpu_custom_call.1
= control target key start
LH: loop header
LB: loop body
LE: loop exit
PB: predicated region body
PF: predicated region fallthrough
CT: control target
= control target key end

     0   :  { %8 = vsyncpa [#allocation3], 0  ;;  %s908_s0 = inlined_call_operand.hbm [shape: f32[2,4,256], index: 0, kind: input, shape index: {}]   ;;  %s909_s1 = inlined_call_operand.vmem [shape: f32[8,4], index: 1, kind: input, shape index: {}]   ;;  %s910_s2 = inlined_call_operand.vmem [shape: f32[4,8], index: 2, kind: input, shape index: {}]   ;;  %s911_s3 = inlined_call_operand.hbm [shape: f32[2,4,256], index: 3, kind: output, shape index: {}]  }
   0x1   :  { %10 = vsyncpa [#allocation3 + $0x1], 0 }
   0x2   :  { %11 = vsyncpa [#allocation4], 0 }
   0x3   :  { %13 = vsyncpa [#allocation4 + $0x1], 0  ;;  %s730_s12 = smov 0   ;;  %s732_s13 = smov 0  }
   0x4   :  { %s734_s14 = smov 0   ;;  %s736_s15 = smov 0  }
   0x5   :  { %s738_s16 = smov 0   ;;  %s740_s17 = smov 0  }
   0x6   :  { %s742_s18 = smov 0   ;;  %s744_s19 = smov 0  }
   0x7 LB: > { %s466_s20 = sadd.s32 4294967295, %s704_s19   ;;  %s467_s21 = sadd.s32 4294967294, %s704_s19   ;;  %s704_s19 = sphi %s744_s19, %s19_s19   ;;  %s700_s18 = sphi %s742_s18, %s927_s18   ;;  %s696_s17 = sphi %s740_s17, %s926_s17   ;;  %s692_s16 = sphi %s738_s16, %s925_s16   ;;  %s688_s15 = sphi %s736_s15, %s924_s15   ;;  %s684_s14 = sphi %s734_s14, %s923_s14   ;;  %s680_s13 = sphi %s732_s13, %s922_s13   ;;  %s676_s12 = sphi %s730_s12, %s921_s12  }
   0x8   : > { %s28_s22 = sadd.s32 1, %s696_s17  ;;  %s31_s23 = sadd.s32 1, %s700_s18 }
   0x9   : > { %p29_p0 = scmp.ge.s32.totalorder %s28_s22, 2  ;;  %s40_s24 = sadd.s32 1, %s684_s14 }
   0xa   : > { %p47_p1 = scmp.ne.s32.totalorder %s684_s14, %s680_s13  ;;  %p48_p2 = scmp.eq.s32.totalorder %s704_s19, 0 }
   0xb   : > { %s929_s22 = smov (%p29_p0, %s28_s22), 0  ;;  %s931_s23 = smov (!%p29_p0, %s31_s23), %s700_s18 }
   0xc   : > { %s36_s25 = ssub.s32 %s696_s17, %s929_s22  ;;  %p783_p3 = por %p48_p2, %p47_p1 }
   0xd   : > { %p33_p4 = scmp.ge.s32.totalorder %s931_s23, 2  ;;  %p53_p5 = scmp.ne.s32.totalorder %s680_s13, %s676_s12 }
   0xe   : > { %p54_p6 = scmp.eq.s32.totalorder %s466_s20, 0  ;;  %p121_p7 = scmp.eq.s32.totalorder %s466_s20, 3 }
   0xf   : > { %s933_s23 = smov (%p33_p4, %s931_s23), 0  ;;  %p127_p10 = scmp.eq.s32.totalorder %s467_s21, 3 }
  0x10   : > { %914 = sst [smem:[#allocation8_spill]] %s933_s23  ;;  %p791_p8 = por %p54_p6, %p53_p5 }
  0x11   : > { %p795_p9 = por %p121_p7, %p47_p1  ;;  %s35_s29 = ssub.s32 %s700_s18, %s933_s23 }
  0x12   : > { %s37_s30 = sor.u32 %s36_s25, %s35_s29  ;;  %p801_p12 = por %p127_p10, %p53_p5 }
  0x13   : > { %p38_p11 = scmp.eq.s32.totalorder %s37_s30, 0  ;;  %p510_p13 = scmp.lt.s32.totalorder %s704_s19, 4 }
  0x14   : > { %s917_s4 = scalar_select %p801_p12, 1, 0 }
  0x15   : > { %s153_s5 = sand.u32 1, %s684_s14   ;;  %s471_s8 = sshll.u32 %s700_s18, 1 }
  0x16   : > { %s808_s6 = scalar_select %p38_p11, %s684_s14, %s40_s24  }
  0x17   : > { %s470_s7 = sshll.u32 %s153_s5, 2  ;;  %s162_s9 = sadd.s32 %s696_s17, %s471_s8 }
  0x18   : > { %s157_s10 = scalar_lea.vmem [#allocation2], %s470_s7  ;;  %s472_s20 = sshll.u32 %s162_s9, 6 }
  0x19   : > { %s166_s11 = sshll.u32 %s157_s10, 4  ;;  %s164_s25 = scalar_lea.hbm %s908_s0, %s472_s20  ;;  %s167_s11 = int_to_ptr.vmem [resolvable:$true] %s166_s11 }
  0x1a   : > { %p817_p0 = pnand %p510_p13, %p783_p3  ;;  %p473_p1 = scmp.ge.s32.totalorder %s704_s19, 1 }
  0x1b   : > { %p171_p2 = scmp.lt.s32.totalorder %s704_s19, 5  ;;  %s154_s24 = scalar_lea.sflag [#allocation3], %s153_s5 }
  0x1c   : > { %p582_p4 = pneg %p817_p0  ;;  %s593_s30 = scalar_lea.vmem %s167_s11, 64 }
  0x1d   : > { %p594_p5 = scmp.ne.s32.totalorder %s167_s11, %s593_s30  ;;  %s706_s7 = smov [#allocation2]  }
  0x1e   : > { %s598_s8 = sshll.u32 %s706_s7, 4  ;;  %s599_s8 = int_to_ptr.vmem [resolvable:$false] %s598_s8 }
  0x1f   : > { %p596_p6 = pnand %p594_p5, %p582_p4  ;;  %s600_s23 = scalar_lea.vmem %s599_s8, 128 }
  0x20   : > { %p601_p10 = scmp.lt.s32.totalorder %s167_s11, %s599_s8  ;;  %p602_p11 = scmp.lt.s32.totalorder %s600_s23, %s593_s30 }
  0x21   : > { %p597_p7 = pneg %p596_p6 }
  0x22   : > { %p603_p3 = por %p602_p11, %p601_p10 }
  0x24   : > { %p604_p13 = pnand %p603_p3, %p597_p7 }
  0x26   : > { %607 = shalt.err (!%p604_p13)
}
  0x27   : > { %505 = dma.hbm_to_vmem [thread:$0]  (!%p817_p0), %s164_s25, 64, %s167_s11, %s154_s24  }
  0x28   : > { %p172_p12 = pnand %p473_p1, %p171_p2 }
  0x29   : > { %s832_s26 = sand.u32 (!%p172_p12), 1, %s680_s13  }
  0x2a   : > { %175 = sbr.rel (%p172_p12) target bundleno = 473 (0x1d9), region = 32  ;;  %s474_s5 = sshll.u32 (!%p172_p12), %s832_s26, 2 }
  0x2b   : > { %s178_s9 = scalar_lea.sflag (!%p172_p12), [#allocation3], %s832_s26  ;;  %s181_s10 = scalar_lea.vmem (!%p172_p12), [#allocation2], %s474_s5 }
  0x2f   : > { %667 = dma.done.wait (%p791_p8), %s178_s9, 64  }
  0x30   : > { %669 = vsyncadd (%p791_p8), %s178_s9, 4294967232  ;;  %v707_v0 = vmov 0.0   ;;  %vm708_vm0 = vmmov 0   ;;  %vm211_vm1 = vcmask 1043456   ;;  %vm207_vm2 = vcmask 31744   ;;  %v205_v2 = vld [vmem:[%s909_s1] sm:$0xff] }
  0x31   : > { %488 = vmatprep.subr.mxu0 %v707_v0  ;;  %490 = vmatprep.mubr.msk.f32.mxu0 %vm708_vm0, %v707_v0  ;;  %v204_v1 = vld [vmem:[%s181_s10] sm:$0xf]  ;;  %vm290_vm3 = vcmask 64512   ;;  %s480_s25 = sshll.u32 %s692_s16, 1  ;;  %s203_s24 = scalar_lea.vmem [#allocation5], %s474_s5 }
  0x32   : > { %493 = vmatprep.subr.mxu1 %v707_v0  ;;  %495 = vmatprep.mubr.msk.f32.mxu1 %vm708_vm0, %v707_v0  ;;  %v206_v10 = vld [vmem:[%s910_s2] sm:$0xf]  ;;  %s377_s29 = sadd.s32 %s688_s15, %s480_s25  ;;  %s381_s30 = sshll.u32 %s203_s24, 4  ;;  %s852_s30 = int_to_ptr.vmem [resolvable:$true] %s381_s30 }
  0x33   : > { %489 = vmatpush3.msk.msra.mxu0 %vm211_vm1, %v204_v1  ;;  %s481_s7 = sshll.u32 %s377_s29, 6  ;;  %s366_s10 = scalar_lea.sflag [#allocation4], %s832_s26 }
  0x34   : > { %491 = vmatmul.mubr.msk.f32.vlgmr.msra.gmra.mxu0 %vm207_vm2, %v205_v2  ;;  %s857_s9 = scalar_lea.hbm %s911_s3, %s481_s7  ;;  %s608_s16 = scalar_lea.vmem %s852_s30, 64 }
  0x35   : > { %p609_p8 = scmp.ne.s32.totalorder %s852_s30, %s608_s16  ;;  %s709_s15 = smov [#allocation5]  }
  0x36   : > { %s612_s5 = sshll.u32 %s709_s15, 4  ;;  %s613_s5 = int_to_ptr.vmem [resolvable:$false] %s612_s5 }
  0x37   : > { %p610_p12 = pnand %p609_p8, %p795_p9  ;;  %s614_s11 = scalar_lea.vmem %s613_s5, 128 }
  0x38   : > { %p615_p1 = scmp.lt.s32.totalorder %s852_s30, %s613_s5  ;;  %p616_p2 = scmp.lt.s32.totalorder %s614_s11, %s608_s16 }
  0x39   : > { %p611_p0 = pneg %p610_p12 }
  0x3a   : > { %p617_p4 = por %p616_p2, %p615_p1 }
  0x3c   : > { %p618_p5 = pnand %p617_p4, %p611_p0 }
  0xf4   : > { %v281_v3 = vpop.f32.mrf.mxu0 }
  0xf5   : > { %v286_v4 = vmul.f32 0.70710677, %v281_v3  ;;  %v285_v7 = vmul.f32 0.5, %v281_v3 }
  0xf6   : > { %v492_v5 = vpop.f32.mrf.mxu0 }
  0xf7   : > { %578 = verf.f32 %v286_v4 }
 0x104   : > { %v579_v6 = vpop.eup %578 }
 0x105   : > { %v288_v8 = vadd.f32 1.0, %v579_v6 }
 0x107   : > { %v289_v9 = vmul.f32 %v288_v8, %v285_v7 }
 0x109   : > { %494 = vmatpush3.msra.mxu1 %v289_v9 }
 0x10a   : > { %496 = vmatmul.mubr.msk.f32.vlgmr.msra.gmra.mxu1 %vm290_vm3, %v206_v10 }
 0x1ca   : > { %v360_v11 = vpop.f32.mrf.mxu1 }
 0x1cb   : > { %364 = vst [vmem:[%s203_s24] sm:$0xf] %v360_v11 }
 0x1cc   : > { %v497_v12 = vpop.f32.mrf.mxu1 }
 0x1cd   : > { %621 = shalt.err (!%p618_p5)
}
 0x1ce   : > { %s622_s20 = scalar_lea.hbm %s857_s9, 64  ;;  %s626_s21 = scalar_lea.hbm %s911_s3, 256 }
 0x1cf   : > { %p623_p6 = scmp.ne.s32.totalorder %s857_s9, %s622_s20  ;;  %p627_p11 = scmp.lt.s32.totalorder %s857_s9, %s911_s3 }
 0x1d0   : > { %p628_p3 = scmp.lt.s32.totalorder %s626_s21, %s622_s20 }
 0x1d1   : > { %p624_p7 = pnand %p623_p6, %p795_p9 }
 0x1d2   : > { %p629_p13 = por %p628_p3, %p627_p11 }
 0x1d3   : > { %p625_p10 = pneg %p624_p7 }
 0x1d5   : > { %p630_p8 = pnand %p629_p13, %p625_p10 }
 0x1d7   : > { %633 = shalt.err (!%p630_p8)
}
 0x1d8   : > { %500 = dma.vmem_to_hbm [thread:$0]  (%p795_p9), %s852_s30, 64, %s857_s9, %s366_s10  }
 0x1d9 PF: > { %p511_p12 = scmp.ge.s32.totalorder %s704_s19, 2  ;;  %s393_s24 = sand.u32 1, %s676_s12  }
 0x1da   : > { %p919_p0 = scmp.ne.s32.totalorder %s917_s4, 0  ;;  %s394_s7 = scalar_lea.sflag [#allocation4], %s393_s24 }
 0x1dc   : > { %p507_p1 = pnand %p511_p12, %p919_p0 }
 0x1de   : > { %p508_p2 = pneg %p507_p1 }
 0x1e0   : > { %671 = dma.done.wait (%p508_p2), %s394_s7, 64  }
 0x1e1   : > { %673 = vsyncadd (%p508_p2), %s394_s7, 4294967232  ;;  %s19_s19 = sadd.s32 1, %s704_s19   ;;  %s920_s28 = sld [smem:[#allocation8_spill]] }
 0x1e2   : > { %p16_p4 = scmp.ge.s32.totalorder %s19_s19, 6   ;;  %s921_s12 = smov %s680_s13 }
 0x1e3   : > { %s922_s13 = smov %s684_s14  ;;  %s923_s14 = smov %s808_s6 }
 0x1e4   : > { %s924_s15 = smov %s696_s17  ;;  %s925_s16 = smov %s700_s18 }
 0x1e5   : > { %s926_s17 = smov %s929_s22  ;;  %18 = sbr.rel (!%p16_p4) target bundleno = 7 (0x7), region = 77 }
 0x1e7   : > { %s927_s18 = smov %s920_s28 }
 0x1ea   :  { %399 = vsyncpa [#allocation3], 1 }
 0x1eb   :  { %401 = vsyncpa [#allocation3 + $0x1], 1 }
 0x1ec   :  { %402 = vsyncpa [#allocation4], 1 }
 0x1ed   :  { %404 = vsyncpa [#allocation4 + $0x1], 1 }

</bundles_post_ra>
